<compile_context>
chip_gen: v7x
topology: tpu7x:2x2x1
jax: 0.10.0
libtpu: 0.0.40
codegen_flags: <defaults>
</compile_context>

<pallas_src>
import functools

import jax
import jax.numpy as jnp
from jax.experimental import pallas as pl
from jax.experimental.pallas import tpu as pltpu


def _round_up(v, m):
    return (v + m - 1) // m * m


def _leaky_relu(x, slope=0.1):
    # slope < 1  =>  max(x, slope*x) == leaky_relu(x); one mul + one max on VPU.
    return jnp.maximum(x, slope * x)


def mlp_kernel(x_ref, w1_ref, w2_ref, w3_ref, w4_ref, o_ref):
    # Whole MLP fused; all operands VMEM-resident for this batch tile.
    x = x_ref[...]
    if x.dtype != jnp.bfloat16:          # trace-time branch; no-op if x is bf16
        x = x.astype(jnp.bfloat16)
    h = _leaky_relu(jnp.dot(x, w1_ref[...], preferred_element_type=jnp.float32))
    h = _leaky_relu(jnp.dot(h.astype(jnp.bfloat16), w2_ref[...],
                            preferred_element_type=jnp.float32))
    h = _leaky_relu(jnp.dot(h.astype(jnp.bfloat16), w3_ref[...],
                            preferred_element_type=jnp.float32))
    # Final layer: (1, Fp) contracted with (bm, Fp) on the last dim of both
    # (same MXU pattern as q @ k.T) -> (1, bm): batch lands on the lane axis,
    # so the store below is lane-dense (unmasked vst for bm multiples of 128).
    out_row = jax.lax.dot_general(
        w4_ref[...], h.astype(jnp.bfloat16),
        dimension_numbers=(((1,), (1,)), ((), ())),
        preferred_element_type=jnp.float32)
    o_ref[...] = out_row.astype(o_ref.dtype)


def prepare_params(w1, w2, w3, w4):
    """One-time (model-load) weight prep.

    PyTorch layout (out, in) -> (in, out), cast to bf16 for the MXU, and
    zero-pad the narrow hidden dims (5F and F) up to multiples of 128 so the
    activation vregs and the final layer are lane-dense.  Padding is exact:
    padded hidden units are identically 0 and leaky_relu(0) == 0.
    """
    d10f = w1.shape[0]                      # 10F
    d5f = w2.shape[0]                       # 5F
    f = w3.shape[0]                         # F
    d5f_p = _round_up(d5f, 128)
    f_p = _round_up(f, 128)

    w1t = jnp.transpose(w1).astype(jnp.bfloat16)                        # (20F, 10F)
    w2t = jnp.zeros((d10f, d5f_p), jnp.bfloat16)
    w2t = w2t.at[:, :d5f].set(jnp.transpose(w2).astype(jnp.bfloat16))   # (10F, 5Fp)
    w3t = jnp.zeros((d5f_p, f_p), jnp.bfloat16)
    w3t = w3t.at[:d5f, :f].set(jnp.transpose(w3).astype(jnp.bfloat16))  # (5Fp, Fp)
    w4r = jnp.zeros((1, f_p), jnp.bfloat16)
    w4r = w4r.at[:, :f].set(w4.astype(jnp.bfloat16))                    # (1, Fp)
    return w1t, w2t, w3t, w4r


def _pick_bm(B, block_b):
    """Batch-tile rows.

    Big tiles amortize the ~0.35us/grid-step pipeline overhead; for B > 512 the
    tile is capped near B/2 so the 'parallel' axis has >= 2 steps (lets v7x
    shard across both TensorCores).  Rows must be a multiple of 8 unless the
    tile spans the whole batch.
    """
    blk = max(8, block_b - block_b % 8)
    if B <= 512:
        return min(B, blk)
    return min(blk, _round_up(pl.cdiv(B, 2), 8))


@functools.partial(jax.jit, static_argnames=("block_b",))
def discriminator_double4(x, params, *, block_b=1024):
    """x: (B, 20F) f32 or bf16.  params: output of prepare_params.  -> (B, 1) f32."""
    w1t, w2t, w3t, w4r = params
    B, d_in = x.shape
    bm = _pick_bm(B, block_b)
    nblk = pl.cdiv(B, bm)

    # Weights: full blocks, same block every grid step -> stay VMEM-resident.
    def full(a):
        return pl.BlockSpec(a.shape, lambda i: (0,) * a.ndim,
                            memory_space=pltpu.VMEM)

    flops = 2 * B * (w1t.shape[0] * w1t.shape[1]
                     + w2t.shape[0] * w2t.shape[1]
                     + w3t.shape[0] * w3t.shape[1]
                     + w4r.shape[1])
    bytes_accessed = (x.size * x.dtype.itemsize
                      + sum(int(w.size) * w.dtype.itemsize
                            for w in (w1t, w2t, w3t, w4r))
                      + nblk * bm * 4)

    y = pl.pallas_call(
        mlp_kernel,
        out_shape=jax.ShapeDtypeStruct((nblk, bm), jnp.float32),
        grid=(nblk,),
        in_specs=[
            pl.BlockSpec((bm, d_in), lambda i: (i, 0),
                         memory_space=pltpu.VMEM),
            full(w1t), full(w2t), full(w3t), full(w4r),
        ],
        # Lane-dense output: one (1, bm) row per grid step.
        out_specs=pl.BlockSpec((1, bm), lambda i: (i, 0),
                               memory_space=pltpu.VMEM),
        compiler_params=pltpu.CompilerParams(
            dimension_semantics=("parallel",)),
        cost_estimate=pl.CostEstimate(flops=flops, transcendentals=0,
                                      bytes_accessed=bytes_accessed),
    )(x, w1t, w2t, w3t, w4r)

    # (nblk, bm) row-major flatten preserves batch order; drop ragged-tile rows.
    return y.reshape(nblk * bm)[:B].reshape(B, 1)


def reference_f32(x, w1, w2, w3, w4):
    """Exact PyTorch-semantics reference in f32."""
    lr = lambda v: jnp.maximum(v, 0.1 * v)
    h = lr(x @ w1.T)
    h = lr(h @ w2.T)
    h = lr(h @ w3.T)
    return h @ w4.T


def reference_bf16(x, params):
    """Pure-JAX reference with the same bf16 cast chain / padding as the kernel."""
    w1t, w2t, w3t, w4r = params
    lr = lambda v: jnp.maximum(v, 0.1 * v)
    h = lr(jnp.dot(x.astype(jnp.bfloat16), w1t,
                   preferred_element_type=jnp.float32))
    h = lr(jnp.dot(h.astype(jnp.bfloat16), w2t,
                   preferred_element_type=jnp.float32))
    h = lr(jnp.dot(h.astype(jnp.bfloat16), w3t,
                   preferred_element_type=jnp.float32))
    return jnp.dot(h.astype(jnp.bfloat16), jnp.transpose(w4r),
                   preferred_element_type=jnp.float32)


if __name__ == "__main__":
    feature_maps = 16
    F = feature_maps
    B = 8

    key = jax.random.PRNGKey(0)
    kx, k1, k2, k3, k4 = jax.random.split(key, 5)

    # Deterministic init (uniform, Kaiming-like scale), PyTorch layout (out, in).
    def init_w(k, out_f, in_f):
        bound = 1.0 / jnp.sqrt(in_f)
        return jax.random.uniform(k, (out_f, in_f), jnp.float32, -bound, bound)

    w1 = init_w(k1, 10 * F, 20 * F)   # (160, 320)
    w2 = init_w(k2, 5 * F, 10 * F)    # (80, 160)
    w3 = init_w(k3, F, 5 * F)         # (16, 80)
    w4 = init_w(k4, 1, F)             # (1, 16)
    x = jax.random.normal(kx, (B, 20 * F), jnp.float32)

    params = prepare_params(w1, w2, w3, w4)   # one-time, model-load cost

    out = jax.block_until_ready(discriminator_double4(x, params))
    assert out.shape == (B, 1)
    # Tight check vs. a pure-JAX reference with identical bf16 quantization.
    ref_q = reference_bf16(x, params)
    assert jnp.allclose(out, ref_q, atol=2e-3, rtol=2e-3)
    # Loose check vs. exact f32 module semantics (bf16 quantization noise only).
    ref = reference_f32(x, w1, w2, w3, w4)
    assert jnp.allclose(out, ref, atol=5e-2, rtol=5e-2)

    # Multi-block + ragged-batch path (exercises the lane-dense output layout
    # and the grid pipelining with a small forced tile).
    B2 = 40
    x2 = jax.random.normal(jax.random.PRNGKey(1), (B2, 20 * F), jnp.float32)
    out2 = jax.block_until_ready(discriminator_double4(x2, params, block_b=16))
    assert out2.shape == (B2, 1)
    assert jnp.allclose(out2, reference_bf16(x2, params), atol=2e-3, rtol=2e-3)

    print("KERNEL_OK")
</pallas_src>

<mosaic_0001>
module attributes {stable_mosaic.version = 11 : i64} {
  func.func @mlp_kernel(%arg0: i32, %arg1: memref<8x320xf32, #tpu.memory_space<vmem>>, %arg2: memref<320x160xbf16, #tpu.memory_space<vmem>>, %arg3: memref<160x128xbf16, #tpu.memory_space<vmem>>, %arg4: memref<128x128xbf16, #tpu.memory_space<vmem>>, %arg5: memref<1x128xbf16, #tpu.memory_space<vmem>>, %arg6: memref<1x8xf32, #tpu.memory_space<vmem>>) attributes {dimension_semantics = [#tpu.dimension_semantics<parallel>], iteration_bounds = array<i64: 1>, scalar_prefetch = 0 : i64, scratch_operands = 0 : i64, tpu.core_type = #tpu.core_type<tc>, window_params = [{transform_indices = @transform_0, window_bounds = array<i64: 8, 320>}, {pipeline_mode = #tpu.pipeline_mode<synchronous>, transform_indices = @transform_1, window_bounds = array<i64: 320, 160>}, {pipeline_mode = #tpu.pipeline_mode<synchronous>, transform_indices = @transform_2, window_bounds = array<i64: 160, 128>}, {pipeline_mode = #tpu.pipeline_mode<synchronous>, transform_indices = @transform_3, window_bounds = array<i64: 128, 128>}, {pipeline_mode = #tpu.pipeline_mode<synchronous>, transform_indices = @transform_4, window_bounds = array<i64: 1, 128>}, {transform_indices = @transform_5, window_bounds = array<i64: 1, 8>}]} {
    %c0 = arith.constant 0 : index
    %c0_0 = arith.constant 0 : index
    %0 = vector.load %arg1[%c0, %c0_0] : memref<8x320xf32, #tpu.memory_space<vmem>>, vector<8x320xf32>
    %1 = arith.truncf %0 : vector<8x320xf32> to vector<8x320xbf16>
    %c0_1 = arith.constant 0 : index
    %c0_2 = arith.constant 0 : index
    %2 = vector.load %arg2[%c0_1, %c0_2] : memref<320x160xbf16, #tpu.memory_space<vmem>>, vector<320x160xbf16>
    %cst = arith.constant dense<0.000000e+00> : vector<8x160xf32>
    %3 = tpu.matmul %1, %2, %cst {dimension_numbers = #tpu.dot_dimension_numbers<[1], [0], [0], [1], [0, 0, 1, 1], [], []>} : vector<8x320xbf16>, vector<320x160xbf16>, vector<8x160xf32> -> vector<8x160xf32>
    %cst_3 = arith.constant 1.000000e-01 : f32
    %4 = vector.broadcast %cst_3 : f32 to vector<8x160xf32>
    %5 = arith.mulf %4, %3 : vector<8x160xf32>
    %6 = arith.maximumf %3, %5 : vector<8x160xf32>
    %7 = arith.truncf %6 : vector<8x160xf32> to vector<8x160xbf16>
    %c0_4 = arith.constant 0 : index
    %c0_5 = arith.constant 0 : index
    %8 = vector.load %arg3[%c0_4, %c0_5] : memref<160x128xbf16, #tpu.memory_space<vmem>>, vector<160x128xbf16>
    %cst_6 = arith.constant dense<0.000000e+00> : vector<8x128xf32>
    %9 = tpu.matmul %7, %8, %cst_6 {dimension_numbers = #tpu.dot_dimension_numbers<[1], [0], [0], [1], [0, 0, 1, 1], [], []>} : vector<8x160xbf16>, vector<160x128xbf16>, vector<8x128xf32> -> vector<8x128xf32>
    %cst_7 = arith.constant 1.000000e-01 : f32
    %10 = vector.broadcast %cst_7 : f32 to vector<8x128xf32>
    %11 = arith.mulf %10, %9 : vector<8x128xf32>
    %12 = arith.maximumf %9, %11 : vector<8x128xf32>
    %13 = arith.truncf %12 : vector<8x128xf32> to vector<8x128xbf16>
    %c0_8 = arith.constant 0 : index
    %c0_9 = arith.constant 0 : index
    %14 = vector.load %arg4[%c0_8, %c0_9] : memref<128x128xbf16, #tpu.memory_space<vmem>>, vector<128x128xbf16>
    %cst_10 = arith.constant dense<0.000000e+00> : vector<8x128xf32>
    %15 = tpu.matmul %13, %14, %cst_10 {dimension_numbers = #tpu.dot_dimension_numbers<[1], [0], [0], [1], [0, 0, 1, 1], [], []>} : vector<8x128xbf16>, vector<128x128xbf16>, vector<8x128xf32> -> vector<8x128xf32>
    %cst_11 = arith.constant 1.000000e-01 : f32
    %16 = vector.broadcast %cst_11 : f32 to vector<8x128xf32>
    %17 = arith.mulf %16, %15 : vector<8x128xf32>
    %18 = arith.maximumf %15, %17 : vector<8x128xf32>
    %c0_12 = arith.constant 0 : index
    %c0_13 = arith.constant 0 : index
    %19 = vector.load %arg5[%c0_12, %c0_13] : memref<1x128xbf16, #tpu.memory_space<vmem>>, vector<1x128xbf16>
    %20 = arith.truncf %18 : vector<8x128xf32> to vector<8x128xbf16>
    %cst_14 = arith.constant dense<0.000000e+00> : vector<1x8xf32>
    %21 = tpu.matmul %19, %20, %cst_14 {dimension_numbers = #tpu.dot_dimension_numbers<[1], [1], [0], [0], [0, 0, 1, 0], [], []>} : vector<1x128xbf16>, vector<8x128xbf16>, vector<1x8xf32> -> vector<1x8xf32>
    %c0_15 = arith.constant 0 : index
    %c0_16 = arith.constant 0 : index
    %22 = vector.load %arg6[%c0_15, %c0_16] : memref<1x8xf32, #tpu.memory_space<vmem>>, vector<1x8xf32>
    tpu.vector_store %arg6[%c0_15, %c0_16], %21 {strides = array<i32>} : memref<1x8xf32, #tpu.memory_space<vmem>>, vector<1x8xf32>,
    return
  }
  func.func @transform_0(%arg0: i32) -> (i32, i32) {
    %c0_i32 = arith.constant 0 : i32
    %c0_i32_0 = arith.constant 0 : i32
    return %arg0, %c0_i32 : i32, i32
  }
  func.func @transform_1(%arg0: i32) -> (i32, i32) {
    %c0_i32 = arith.constant 0 : i32
    %c0_i32_0 = arith.constant 0 : i32
    %c0_i32_1 = arith.constant 0 : i32
    return %c0_i32, %c0_i32_0 : i32, i32
  }
  func.func @transform_2(%arg0: i32) -> (i32, i32) {
    %c0_i32 = arith.constant 0 : i32
    %c0_i32_0 = arith.constant 0 : i32
    %c0_i32_1 = arith.constant 0 : i32
    return %c0_i32, %c0_i32_0 : i32, i32
  }
  func.func @transform_3(%arg0: i32) -> (i32, i32) {
    %c0_i32 = arith.constant 0 : i32
    %c0_i32_0 = arith.constant 0 : i32
    %c0_i32_1 = arith.constant 0 : i32
    return %c0_i32, %c0_i32_0 : i32, i32
  }
  func.func @transform_4(%arg0: i32) -> (i32, i32) {
    %c0_i32 = arith.constant 0 : i32
    %c0_i32_0 = arith.constant 0 : i32
    %c0_i32_1 = arith.constant 0 : i32
    return %c0_i32, %c0_i32_0 : i32, i32
  }
  func.func @transform_5(%arg0: i32) -> (i32, i32) {
    %c0_i32 = arith.constant 0 : i32
    %c0_i32_0 = arith.constant 0 : i32
    return %arg0, %c0_i32 : i32, i32
  }
}

</mosaic_0001>

<bundles_post_ra>
// kernel: discriminator_double4.1
= control target key start
LH: loop header
LB: loop body
LE: loop exit
PB: predicated region body
PF: predicated region fallthrough
CT: control target
= control target key end

     0   :  { %v858_v2 = vmov 0   ;;  %s1101_s0 = inlined_call_operand.vmem [shape: f32[8,320], index: 0, kind: input, shape index: {}]   ;;  %s1102_s1 = inlined_call_operand.vmem [shape: bf16[320,160], index: 1, kind: input, shape index: {}]   ;;  %s1103_s2 = inlined_call_operand.vmem [shape: bf16[160,128], index: 2, kind: input, shape index: {}]   ;;  %s1104_s3 = inlined_call_operand.vmem [shape: bf16[128,128], index: 3, kind: input, shape index: {}]   ;;  %s1105_s4 = inlined_call_operand.vmem [shape: bf16[1,128], index: 4, kind: input, shape index: {}]   ;;  %s1106_s5 = inlined_call_operand.hbm [shape: f32[1,8], index: 5, kind: output, shape index: {}]  }
   0x1   :  { %v756_v0 = vld [vmem:[%s1102_s1 + $0x4] ss:$8 sps:$4 sm:$0xff]   ;;  %v758_v1 = vld [vmem:[%s1102_s1] ss:$8 sps:$4 sm:$0xff]   ;;  %444 = vmatprep.subr.bf16.mxu1 %v858_v2  ;;  %v759_v3 = vld [vmem:[%s1102_s1 + $0x14] ss:$8 sps:$4 sm:$0xff]  }
   0x2   :  { %272 = vmatprep.subr.bf16.mxu0 %v756_v0  ;;  %v761_v4 = vld [vmem:[%s1102_s1 + $0x10] ss:$8 sps:$4 sm:$0xff]   ;;  %v762_v5 = vld [vmem:[%s1102_s1 + $0x24] ss:$8 sps:$4 sm:$0xff]   ;;  %v764_v6 = vld [vmem:[%s1102_s1 + $0x20] ss:$8 sps:$4 sm:$0xff]  }
   0x3   :  { %273 = vmatpush1.bf16.msra.mxu0 %v758_v1  ;;  %v765_v7 = vld [vmem:[%s1102_s1 + $0x34] ss:$8 sps:$4 sm:$0xff]   ;;  %v767_v8 = vld [vmem:[%s1102_s1 + $0x30] ss:$8 sps:$4 sm:$0xff]   ;;  %v768_v9 = vld [vmem:[%s1102_s1 + $0x44] ss:$8 sps:$4 sm:$0xff]  }
   0x4   :  { %274 = vmatprep.subr.bf16.mxu0 %v759_v3  ;;  %v770_v10 = vld [vmem:[%s1102_s1 + $0x40] ss:$8 sps:$4 sm:$0xff]   ;;  %v771_v11 = vld [vmem:[%s1102_s1 + $0x54] ss:$8 sps:$4 sm:$0xff]   ;;  %v773_v12 = vld [vmem:[%s1102_s1 + $0x50] ss:$8 sps:$4 sm:$0xff]  }
   0x5   :  { %v774_v13 = vld [vmem:[%s1102_s1 + $0x64] ss:$8 sps:$4 sm:$0xff]   ;;  %v776_v16 = vld [vmem:[%s1102_s1 + $0x60] ss:$8 sps:$4 sm:$0xff]   ;;  %v777_v17 = vld [vmem:[%s1102_s1 + $0x74] ss:$8 sps:$4 sm:$0xff]  }
   0x6   :  { %v23_v14 = vld [vmem:[%s1101_s0 + $0x8] sm:$0xff]  ;;  %v779_v18 = vld [vmem:[%s1102_s1 + $0x70] ss:$8 sps:$4 sm:$0xff]   ;;  %v816_v20 = vld [vmem:[%s1103_s2] sm:$0xff]  }
   0x7   :  { %275 = vmatpush1.bf16.msra.mxu0 %v761_v4  ;;  %v26_v15 = vpack.c.bf16 %v23_v14, %v23_v14  ;;  %v780_v19 = vld [vmem:[%s1102_s1 + $0x84] ss:$8 sps:$4 sm:$0xff]   ;;  %445 = vmatpush1.bf16.msra.mxu1 %v816_v20  ;;  %v782_v22 = vld [vmem:[%s1102_s1 + $0x80] ss:$8 sps:$4 sm:$0xff]   ;;  %v783_v23 = vld [vmem:[%s1102_s1 + $0x94] ss:$8 sps:$4 sm:$0xff]  }
   0x8   :  { %276 = vmatprep.subr.bf16.mxu0 %v762_v5  ;;  %v817_v21 = vld [vmem:[%s1103_s2 + $0x8] sm:$0xff]   ;;  %446 = vmatprep.subr.bf16.mxu1 %v858_v2  ;;  %v785_v24 = vld [vmem:[%s1102_s1 + $0x90] ss:$8 sps:$4 sm:$0xff]   ;;  %v789_v29 = vld [vmem:[%s1102_s1 + $0xb4] ss:$8 sps:$4 sm:$0xff]  }
   0x9   :  { %304 = vmatprep.mubr.bf16.mxu0 %v26_v15  ;;  %v818_v25 = vld [vmem:[%s1103_s2 + $0x10] sm:$0xff]   ;;  %v786_v26 = vld [vmem:[%s1102_s1 + $0xa4] ss:$8 sps:$4 sm:$0xff]   ;;  %v819_v27 = vld [vmem:[%s1103_s2 + $0x18] sm:$0xff]  }
   0xa   :  { %v788_v28 = vld [vmem:[%s1102_s1 + $0xa0] ss:$8 sps:$4 sm:$0xff]  }
   0xb   :  { %277 = vmatpush1.bf16.msra.mxu0 %v764_v6  ;;  %447 = vmatpush1.bf16.msra.mxu1 %v817_v21  ;;  %v820_v30 = vld [vmem:[%s1103_s2 + $0x20] sm:$0xff]  }
   0xc   :  { %278 = vmatprep.subr.bf16.mxu0 %v765_v7  ;;  %448 = vmatprep.subr.bf16.mxu1 %v858_v2 }
   0xf   :  { %279 = vmatpush1.bf16.msra.mxu0 %v767_v8  ;;  %449 = vmatpush1.bf16.msra.mxu1 %v818_v25 }
  0x10   :  { %280 = vmatprep.subr.bf16.mxu0 %v768_v9  ;;  %450 = vmatprep.subr.bf16.mxu1 %v858_v2 }
  0x13   :  { %281 = vmatpush1.bf16.msra.mxu0 %v770_v10  ;;  %451 = vmatpush1.bf16.msra.mxu1 %v819_v27 }
  0x14   :  { %282 = vmatprep.subr.bf16.mxu0 %v771_v11 }
  0x17   :  { %283 = vmatpush1.bf16.msra.mxu0 %v773_v12 }
  0x18   :  { %284 = vmatprep.subr.bf16.mxu0 %v774_v13 }
  0x1b   :  { %285 = vmatpush1.bf16.msra.mxu0 %v776_v16 }
  0x1c   :  { %286 = vmatprep.subr.bf16.mxu0 %v777_v17 }
  0x1f   :  { %287 = vmatpush1.bf16.msra.mxu0 %v779_v18 }
  0x20   :  { %288 = vmatprep.subr.bf16.mxu0 %v780_v19 }
  0x23   :  { %289 = vmatpush1.bf16.msra.mxu0 %v782_v22 }
  0x24   :  { %290 = vmatprep.subr.bf16.mxu0 %v783_v23 }
  0x27   :  { %291 = vmatpush1.bf16.msra.mxu0 %v785_v24 }
  0x28   :  { %292 = vmatprep.subr.bf16.mxu0 %v786_v26 }
  0x29   :  { %10 = vsyncpa [#allocation3], 0  ;;  %v791_v31 = vld [vmem:[%s1102_s1 + $0xb0] ss:$8 sps:$4 sm:$0xff]   ;;  %452 = vmatprep.subr.bf16.mxu1 %v858_v2  ;;  %v792_v32 = vld [vmem:[%s1102_s1 + $0xc4] ss:$8 sps:$4 sm:$0xff]  }
  0x2a   :  { %453 = vmatpush1.bf16.msra.mxu1 %v820_v30  ;;  %v821_v33 = vld [vmem:[%s1103_s2 + $0x28] sm:$0xff]   ;;  %v795_v35 = vld [vmem:[%s1102_s1 + $0xd4] ss:$8 sps:$4 sm:$0xff]   ;;  %v797_v37 = vld [vmem:[%s1102_s1 + $0xd0] ss:$8 sps:$4 sm:$0xff]   ;;  %vm268_vm0 = vcmask 523264  }
  0x2b   :  { %293 = vmatpush1.bf16.msra.mxu0 %v788_v28  ;;  %v794_v34 = vld [vmem:[%s1102_s1 + $0xc0] ss:$8 sps:$4 sm:$0xff]   ;;  %454 = vmatprep.subr.bf16.mxu1 %v858_v2  ;;  %v822_v36 = vld [vmem:[%s1103_s2 + $0x30] sm:$0xff]   ;;  %v798_v38 = vld [vmem:[%s1102_s1 + $0xe4] ss:$8 sps:$4 sm:$0xff]   ;;  %v859_v57 = vmov 0.0  }
  0x2c   :  { %294 = vmatprep.subr.bf16.mxu0 %v789_v29  ;;  %v823_v39 = vld [vmem:[%s1103_s2 + $0x38] sm:$0xff]   ;;  %v800_v40 = vld [vmem:[%s1102_s1 + $0xe0] ss:$8 sps:$4 sm:$0xff]   ;;  %v806_v44 = vld [vmem:[%s1102_s1 + $0x104] ss:$8 sps:$4 sm:$0xff]   ;;  %vm440_vm1 = vcmask 261120  }
  0x2d   :  { %v801_v41 = vld [vmem:[%s1102_s1 + $0xf4] ss:$8 sps:$4 sm:$0xff]   ;;  %v803_v42 = vld [vmem:[%s1102_s1 + $0xf0] ss:$8 sps:$4 sm:$0xff]   ;;  %v22_v43 = vld [vmem:[%s1101_s0] sm:$0xff]  ;;  %vm860_vm2 = vmmov 0  }
  0x2e   :  { %455 = vmatpush1.bf16.msra.mxu1 %v821_v33  ;;  %v25_v45 = vpack.c.bf16 %v22_v43, %v22_v43  ;;  %v804_v46 = vld [vmem:[%s1102_s1 + $0x100] ss:$8 sps:$4 sm:$0xff]   ;;  %v809_v47 = vld [vmem:[%s1102_s1 + $0x114] ss:$8 sps:$4 sm:$0xff]   ;;  %v807_v48 = vld [vmem:[%s1102_s1 + $0x110] ss:$8 sps:$4 sm:$0xff]  }
  0x2f   :  { %295 = vmatpush1.bf16.msra.mxu0 %v791_v31  ;;  %456 = vmatprep.subr.bf16.mxu1 %v858_v2  ;;  %v812_v49 = vld [vmem:[%s1102_s1 + $0x124] ss:$8 sps:$4 sm:$0xff]   ;;  %v810_v50 = vld [vmem:[%s1102_s1 + $0x120] ss:$8 sps:$4 sm:$0xff]   ;;  %v815_v51 = vld [vmem:[%s1102_s1 + $0x134] ss:$8 sps:$4 sm:$0xff]  }
  0x30   :  { %296 = vmatprep.subr.bf16.mxu0 %v792_v32  ;;  %v813_v52 = vld [vmem:[%s1102_s1 + $0x130] ss:$8 sps:$4 sm:$0xff]   ;;  %v824_v55 = vld [vmem:[%s1103_s2 + $0x40] sm:$0xff]   ;;  %v825_v56 = vld [vmem:[%s1103_s2 + $0x48] sm:$0xff]   ;;  %s861_s13 = smov [#allocation2]   ;;  %vm635_vm3 = vcmask 57344  }
  0x31   :  { %v24_v53 = vld [vmem:[%s1101_s0 + $0x10] sm:$0xff]  ;;  %v827_v5 = vld [vmem:[%s1104_s3 + $0x8] sm:$0xff]   ;;  %v829_v7 = vld [vmem:[%s1104_s3 + $0x18] sm:$0xff]   ;;  %s643_s14 = sshll.u32 %s861_s13, 4  ;;  %s644_s14 = int_to_ptr.vmem [resolvable:$true] %s643_s14 }
  0x32   :  { %457 = vmatpush1.bf16.msra.mxu1 %v822_v36  ;;  %v27_v54 = vpack.c.bf16 %v24_v53, %v24_v53  ;;  %v828_v6 = vld [vmem:[%s1104_s3 + $0x10] sm:$0xff]   ;;  %v830_v8 = vld [vmem:[%s1104_s3 + $0x20] sm:$0xff]   ;;  %v831_v9 = vld [vmem:[%s1104_s3 + $0x28] sm:$0xff]   ;;  %s834_s15 = scalar_lea.vmem %s644_s14, 16  ;;  %s838_s16 = scalar_lea.vmem %s644_s14, 32 }
  0x33   :  { %297 = vmatpush1.bf16.msra.mxu0 %v794_v34  ;;  %458 = vmatprep.subr.bf16.mxu1 %v858_v2  ;;  %v832_v10 = vld [vmem:[%s1104_s3 + $0x30] sm:$0xff]   ;;  %v833_v11 = vld [vmem:[%s1104_s3 + $0x38] sm:$0xff]   ;;  %v593_v26 = vld [vmem:[%s1105_s4] sm:$0x1]  ;;  %p835_p0 = scmp.ne.s32.totalorder %s644_s14, %s834_s15  ;;  %p839_p1 = scmp.lt.s32.totalorder %s644_s14, %s644_s14 }
  0x34   :  { %298 = vmatprep.subr.bf16.mxu0 %v795_v35  ;;  %p840_p2 = scmp.lt.s32.totalorder %s838_s16, %s834_s15 }
  0x36   :  { %459 = vmatpush1.bf16.msra.mxu1 %v823_v39  ;;  %p841_p3 = por %p840_p2, %p839_p1 }
  0x37   :  { %299 = vmatpush1.bf16.msra.mxu0 %v797_v37  ;;  %460 = vmatprep.subr.bf16.mxu1 %v858_v2 }
  0x38   :  { %300 = vmatprep.subr.bf16.mxu0 %v798_v38  ;;  %p842_p4 = pnand %p841_p3, %p835_p0 }
  0x3a   :  { %461 = vmatpush1.bf16.msra.mxu1 %v824_v55 }
  0x3b   :  { %301 = vmatpush1.bf16.msra.mxu0 %v800_v40  ;;  %462 = vmatprep.subr.bf16.mxu1 %v858_v2 }
  0x3c   :  { %302 = vmatprep.subr.bf16.mxu0 %v801_v41 }
  0x3e   :  { %463 = vmatpush1.bf16.msra.mxu1 %v825_v56 }
  0x3f   :  { %303 = vmatpush1.bf16.msra.mxu0 %v803_v42  ;;  %722 = vmatprep.subr.bf16.mxu1 %v859_v57 }
  0x40   :  { %313 = vmatprep.subr.bf16.mxu0 %v806_v44 }
  0x42   :  { %305 = vmatmul.mubr.bf16.vlgmr.msra.gmra.mrb[0].mxu0 %v25_v45 }
  0x43   :  { %314 = vmatpush1.bf16.msra.mxu0 %v804_v46  ;;  %345 = vmatprep.mubr.bf16.mxu0 %v858_v2  ;;  %v826_v2 = vld [vmem:[%s1104_s3] sm:$0xff]  }
  0x44   :  { %315 = vmatprep.subr.bf16.mxu0 %v809_v47 }
  0x47   :  { %316 = vmatpush1.bf16.msra.mxu0 %v807_v48 }
  0x48   :  { %317 = vmatprep.subr.bf16.mxu0 %v812_v49 }
  0x4b   :  { %318 = vmatpush1.bf16.msra.mxu0 %v810_v50 }
  0x4c   :  { %319 = vmatprep.subr.bf16.mxu0 %v815_v51 }
  0x4f   :  { %320 = vmatpush1.bf16.msra.mxu0 %v813_v52 }
  0x52   :  { %691 = vmatmul.mubr.msk.bf16.vlgmr.msra.gmra.mrb[0].mxu0 %vm268_vm0, %v27_v54 }
 0x125   :  { %v347_v58 = vpop.f32.mrb[0].mxu0 }
 0x126   :  { %v354_v59 = vmul.f32 0.1, %v347_v58  ;;  %v349_v60 = vpop.f32.mrb[1].mxu0 }
 0x127   :  { %v355_v61 = vmul.f32 0.1, %v349_v60  ;;  %v351_v62 = vpop.f32.mrb[2].mxu0 }
 0x128   :  { %v356_v63 = vmax.f32 %v347_v58, %v354_v59  ;;  %v352_v0 = vpop.f32.mrb[3].mxu0 }
 0x129   :  { %v357_v1 = vmax.f32 %v349_v60, %v355_v61 }
 0x12a   :  { %v358_v4 = vpack.c.bf16 %v356_v63, %v356_v63 }
 0x12b   :  { %v359_v3 = vpack.c.bf16 %v357_v1, %v357_v1 }
 0x12d   :  { %702 = vmatprep.mubr.msk.bf16.mxu1 %vm440_vm1, %v359_v3 }
 0x12e   :  { %477 = vmatmul.mubr.bf16.vlgmr.msra.gmra.mrb[0].mxu1 %v358_v4 }
 0x12f   :  { %723 = vmatpush3.bf16.msra.mxu1 %v826_v2  ;;  %738 = vmatprep.mubr.msk.bf16.mxu1 %vm860_vm2, %v859_v57 }
 0x130   :  { %724 = vmatprep.subr.bf16.mxu1 %v859_v57 }
 0x133   :  { %725 = vmatpush3.bf16.msra.mxu1 %v827_v5 }
 0x134   :  { %726 = vmatprep.subr.bf16.mxu1 %v859_v57 }
 0x137   :  { %727 = vmatpush3.bf16.msra.mxu1 %v828_v6 }
 0x138   :  { %728 = vmatprep.subr.bf16.mxu1 %v859_v57 }
 0x13b   :  { %729 = vmatpush3.bf16.msra.mxu1 %v829_v7 }
 0x13c   :  { %730 = vmatprep.subr.bf16.mxu1 %v859_v57 }
 0x13f   :  { %731 = vmatpush3.bf16.msra.mxu1 %v830_v8 }
 0x140   :  { %732 = vmatprep.subr.bf16.mxu1 %v859_v57 }
 0x143   :  { %733 = vmatpush3.bf16.msra.mxu1 %v831_v9 }
 0x144   :  { %734 = vmatprep.subr.bf16.mxu1 %v859_v57 }
 0x147   :  { %735 = vmatpush3.bf16.msra.mxu1 %v832_v10 }
 0x148   :  { %736 = vmatprep.subr.bf16.mxu1 %v859_v57 }
 0x14b   :  { %737 = vmatpush3.bf16.msra.mxu1 %v833_v11 }
 0x14c   :  { %742 = vmatprep.subr.bf16.mxu1 %v859_v57 }
 0x201   :  { %v478_v12 = vpop.f32.mrb[0].mxu1 }
 0x202   :  { %v484_v13 = vmul.f32 0.1, %v478_v12  ;;  %v480_v14 = vpop.f32.mrb[1].mxu1 }
 0x203   :  { %v481_v15 = vpop.f32.mrb[2].mxu1 }
 0x204   :  { %v485_v16 = vmax.f32 %v478_v12, %v484_v13  ;;  %v482_v17 = vpop.f32.mrb[3].mxu1 }
 0x206   :  { %v486_v18 = vpack.c.bf16 %v485_v16, %v485_v16 }
 0x208   :  { %739 = vmatmul.mubr.bf16.vlgmr.msra.gmra.mrb[4].mxu1 %v486_v18 }
 0x209   :  { %744 = vmatprep.mubr.msk.bf16.mxu1 %vm860_vm2, %v859_v57 }
 0x2db   :  { %v585_v19 = vpop.f32.mrb[4].mxu1 }
 0x2dc   :  { %v591_v20 = vmul.f32 0.1, %v585_v19  ;;  %v740_v21 = vpop.f32.mrb[5].mxu1 }
 0x2dd   :  { %v588_v22 = vpop.f32.mrb[6].mxu1 }
 0x2de   :  { %v592_v23 = vmax.f32 %v585_v19, %v591_v20  ;;  %v741_v24 = vpop.f32.mrb[7].mxu1 }
 0x2e0   :  { %v594_v25 = vpack.c.bf16 %v592_v23, %v592_v23 }
 0x2e2   :  { %743 = vmatpush3.bf16.xpose.msra.mxu1 %v594_v25 }
 0x2e9   :  { %745 = vmatmul.mubr.bf16.vlgmr.msra.gmra.mrb[8].mxu1 %v593_v26 }
 0x3bc   :  { %v629_v27 = vpop.f32.mrb[8].mxu1 }
 0x3bd   :  { %636 = vst.msk [vmem:[#allocation2] sm:$0x1] %vm635_vm3, %v629_v27  ;;  %v746_v28 = vpop.f32.mrb[9].mxu1 }
 0x3be   :  { %v632_v29 = vpop.f32.mrb[10].mxu1 }
 0x3bf   :  { %845 = shalt.err (!%p842_p4)
}
 0x3c0   :  { %s846_s4 = scalar_lea.hbm %s1106_s5, 16 }
 0x3c1   :  { %p847_p5 = scmp.ne.s32.totalorder %s1106_s5, %s846_s4  ;;  %p850_p6 = scmp.lt.u32.totalorder %s846_s4, %s1106_s5 }
 0x3c3   :  { %p852_p7 = pnand %p850_p6, %p847_p5 }
 0x3c5   :  { %855 = shalt.err (!%p852_p7)
}
 0x3c6   :  { %646 = dma.vmem_to_hbm [thread:$0]  %s644_s14, 16, %s1106_s5, [#allocation3]   ;;  %v747_v30 = vpop.f32.mrb[11].mxu1 }
 0x3c7   :  { %856 = dma.done.wait [#allocation3], 16  }
 0x3c8   :  { %857 = vsyncadd [#allocation3], 4294967280 }
 0x3c9   :  { %650 = vsyncpa [#allocation3], 1 }

</bundles_post_ra>
